<compile_context>
chip_gen: v5e
topology: v5e:2x2
jax: 0.10.0
libtpu: 0.0.40
codegen_flags: <defaults>
</compile_context>

<pallas_src>
import functools
import math

import jax
import jax.numpy as jnp
from jax.experimental import pallas as pl
from jax.experimental.pallas import tpu as pltpu

N_EMBD = 128          # small, lane-dense test width (multiple of 128)
HIDDEN = 4 * N_EMBD   # 512


def _gelu_tanh(x):
    # GELU with tanh approximation, matching torch.nn.GELU(approximate='tanh')
    c = math.sqrt(2.0 / math.pi)
    return 0.5 * x * (1.0 + jnp.tanh(c * (x + 0.044715 * x * x * x)))


def mlp_kernel(x_ref, w1_ref, b1_ref, w2_ref, b2_ref, o_ref, *, h_chunk):
    """One [TILE_M, C] row tile: out = GELU(x @ W1 + b1) @ W2 + b2."""
    tile_m = x_ref.shape[0]
    H = w1_ref.shape[1]
    C = w2_ref.shape[1]

    x = x_ref[...].astype(jnp.bfloat16)            # MXU operands in bf16
    acc = jnp.zeros((tile_m, C), jnp.float32)

    # Chunk the hidden axis: the live f32 intermediate is [TILE_M, h_chunk]
    # instead of the full [TILE_M, 4C]; the c_proj matmul accumulates over K.
    for ci in range(H // h_chunk):
        lo = ci * h_chunk
        h = jnp.dot(x, w1_ref[:, lo:lo + h_chunk],
                    preferred_element_type=jnp.float32) + b1_ref[:, lo:lo + h_chunk]
        g = _gelu_tanh(h)                          # f32 GELU on the VPU/EUP
        acc = acc + jnp.dot(g.astype(jnp.bfloat16), w2_ref[lo:lo + h_chunk, :],
                            preferred_element_type=jnp.float32)

    o_ref[...] = (acc + b2_ref[...]).astype(o_ref.dtype)


def _round_up(a, b):
    return ((a + b - 1) // b) * b


def _vmem_capacity_bytes():
    """Physical VMEM per TensorCore (128 MiB v5e/v6e, 64 MiB v7x)."""
    try:
        cap = getattr(pltpu.get_tpu_info(), "vmem_capacity_bytes", None)
        if cap:
            return int(cap)
    except Exception:
        pass
    return 64 << 20   # conservative fallback (v7x per-TC budget)


def mlp_forward(x, w_fc, b_fc, w_proj, b_proj, *, tile_m=None, h_chunk=512):
    """x: [B, T, C]; w_fc: [C, 4C]; b_fc: [4C]; w_proj: [4C, C]; b_proj: [C]."""
    B, T, C = x.shape
    H = w_fc.shape[1]
    M = B * T
    io_bytes = jnp.dtype(x.dtype).itemsize

    # --- per-generation VMEM budget / default row tile ------------------------
    vmem_cap = _vmem_capacity_bytes()
    vmem_limit = (vmem_cap * 3) // 4                 # 96 MiB v5e/v6e, 48 MiB v7x
    if tile_m is None:
        tile_m = 1024 if vmem_cap >= (128 << 20) else 512

    # Hidden-axis chunk: must divide H (fallback: single chunk of H).
    h_chunk = min(h_chunk, H)
    if H % h_chunk != 0:
        h_chunk = H

    # --- row tile --------------------------------------------------------------
    # Cap so the grid has >= 2 steps (both v7x TensorCores get work), then
    # round: multiple of 256 when big (256-wide MXU), else multiple of 8.
    TILE_M = min(tile_m, max(8, _round_up(pl.cdiv(M, 2), 8)))
    if TILE_M >= 256:
        TILE_M = (TILE_M // 256) * 256

    # --- VMEM budget check -------------------------------------------------------
    resident = (C * H + H * C) * 2 + (H + C) * 4     # bf16 weights + f32 biases
    if resident > vmem_limit:
        # TODO(synk): add an H-axis grid dimension (f32 [TILE_M, C] accumulator
        # with pl.when init/finalize) once the weights no longer fit VMEM-resident
        # (GPT-2 medium/large, and at half that size on v7x).
        raise ValueError("MLP weights exceed the VMEM budget; H-axis grid tiling needed")

    def _act_bytes(tm):
        # x + out tiles double-buffered, plus f32 h/g chunk intermediates.
        return 2 * 2 * tm * C * io_bytes + 2 * tm * h_chunk * 4

    while resident + _act_bytes(TILE_M) > vmem_limit and TILE_M > 8:
        TILE_M = max(8, _round_up(TILE_M // 2, 8))

    M_pad = _round_up(M, TILE_M)

    x2d = x.reshape(M, C)
    if M_pad != M:
        x2d = jnp.pad(x2d, ((0, M_pad - M), (0, 0)))

    # bf16 weights (halves weight HBM bytes, avoids f32-emulated MXU passes);
    # biases stay f32 and are added after the f32 accumulation.
    w_fc_bf = w_fc.astype(jnp.bfloat16)
    w_proj_bf = w_proj.astype(jnp.bfloat16)
    b_fc2d = b_fc.reshape(1, H).astype(jnp.float32)
    b_proj2d = b_proj.reshape(1, C).astype(jnp.float32)

    grid = (M_pad // TILE_M,)

    cost = pl.CostEstimate(
        flops=2 * M_pad * C * H * 2,                 # two matmuls
        transcendentals=M_pad * H,                   # tanh in GELU
        bytes_accessed=(x2d.size * io_bytes
                        + w_fc_bf.size * 2 + w_proj_bf.size * 2
                        + b_fc.size * 4 + b_proj.size * 4
                        + M_pad * C * io_bytes),
    )

    kernel = functools.partial(mlp_kernel, h_chunk=h_chunk)

    out2d = pl.pallas_call(
        kernel,
        out_shape=jax.ShapeDtypeStruct((M_pad, C), x.dtype),
        grid=grid,
        in_specs=[
            # x: row tiles, default 2-deep pipelining (raise to pl.Buffered(3)
            # only if profiling shows exposed DMA at very small C/H).
            pl.BlockSpec((TILE_M, C), lambda i: (i, 0)),
            # Constant operands: single-buffered (no pointless double-buffer).
            pl.BlockSpec((C, H), lambda i: (0, 0), pipeline_mode=pl.Buffered(1)),
            pl.BlockSpec((1, H), lambda i: (0, 0), pipeline_mode=pl.Buffered(1)),
            pl.BlockSpec((H, C), lambda i: (0, 0), pipeline_mode=pl.Buffered(1)),
            pl.BlockSpec((1, C), lambda i: (0, 0), pipeline_mode=pl.Buffered(1)),
        ],
        out_specs=pl.BlockSpec((TILE_M, C), lambda i: (i, 0)),
        compiler_params=pltpu.CompilerParams(
            dimension_semantics=("parallel",),       # megacore sharding on v7x
            vmem_limit_bytes=vmem_limit,
        ),
        cost_estimate=cost,
    )(x2d, w_fc_bf, b_fc2d, w_proj_bf, b_proj2d)

    return out2d[:M].reshape(B, T, C)


def init_params(key, n_embd):
    """Deterministic nn.Linear-style init (uniform +-1/sqrt(fan_in))."""
    h = 4 * n_embd
    k1, k2, k3, k4 = jax.random.split(key, 4)
    bound_fc = 1.0 / math.sqrt(n_embd)
    bound_pr = 1.0 / math.sqrt(h)
    # Stored already transposed to [in, out] for the kernel.
    w_fc = jax.random.uniform(k1, (n_embd, h), jnp.float32, -bound_fc, bound_fc)
    b_fc = jax.random.uniform(k2, (h,), jnp.float32, -bound_fc, bound_fc)
    w_proj = jax.random.uniform(k3, (h, n_embd), jnp.float32, -bound_pr, bound_pr)
    b_proj = jax.random.uniform(k4, (n_embd,), jnp.float32, -bound_pr, bound_pr)
    return w_fc, b_fc, w_proj, b_proj


if __name__ == "__main__":
    key = jax.random.PRNGKey(0)
    k_x, k_p = jax.random.split(key)

    B, T, C = 2, 16, N_EMBD          # M = 32 rows, lane-dense C = 128
    x = jax.random.normal(k_x, (B, T, C), jnp.float32)
    w_fc, b_fc, w_proj, b_proj = init_params(k_p, C)

    out = mlp_forward(x, w_fc, b_fc, w_proj, b_proj)
    out = jax.block_until_ready(out)
    assert out.shape == (B, T, C)

    # Reference 1: bf16-matmul emulation (same arithmetic as the kernel) — tight.
    x2d = x.reshape(-1, C)
    xb = x2d.astype(jnp.bfloat16)
    h_ref = jnp.dot(xb, w_fc.astype(jnp.bfloat16),
                    preferred_element_type=jnp.float32) + b_fc
    g_ref = _gelu_tanh(h_ref)
    ref_bf = (jnp.dot(g_ref.astype(jnp.bfloat16), w_proj.astype(jnp.bfloat16),
                      preferred_element_type=jnp.float32) + b_proj).reshape(B, T, C)
    assert jnp.allclose(out, ref_bf, atol=2e-3, rtol=2e-3)

    # Reference 2: full f32 module semantics — loose tolerance for bf16 matmuls.
    ref_h32 = _gelu_tanh(x2d @ w_fc + b_fc)
    ref_f32 = (ref_h32 @ w_proj + b_proj).reshape(B, T, C)
    assert jnp.allclose(out, ref_f32, atol=5e-2, rtol=5e-2)

    print("KERNEL_OK")
</pallas_src>

<mosaic_0001>
module attributes {stable_mosaic.version = 11 : i64} {
  func.func @mlp_kernel(%arg0: i32, %arg1: memref<16x128xf32, #tpu.memory_space<vmem>>, %arg2: memref<128x512xbf16, #tpu.memory_space<vmem>>, %arg3: memref<1x512xf32, #tpu.memory_space<vmem>>, %arg4: memref<512x128xbf16, #tpu.memory_space<vmem>>, %arg5: memref<1x128xf32, #tpu.memory_space<vmem>>, %arg6: memref<16x128xf32, #tpu.memory_space<vmem>>) attributes {dimension_semantics = [#tpu.dimension_semantics<parallel>], iteration_bounds = array<i64: 2>, scalar_prefetch = 0 : i64, scratch_operands = 0 : i64, tpu.core_type = #tpu.core_type<tc>, window_params = [{transform_indices = @transform_0, window_bounds = array<i64: 16, 128>}, {pipeline_mode = #tpu.pipeline_mode<synchronous>, transform_indices = @transform_1, window_bounds = array<i64: 128, 512>}, {pipeline_mode = #tpu.pipeline_mode<synchronous>, transform_indices = @transform_2, window_bounds = array<i64: 1, 512>}, {pipeline_mode = #tpu.pipeline_mode<synchronous>, transform_indices = @transform_3, window_bounds = array<i64: 512, 128>}, {pipeline_mode = #tpu.pipeline_mode<synchronous>, transform_indices = @transform_4, window_bounds = array<i64: 1, 128>}, {transform_indices = @transform_5, window_bounds = array<i64: 16, 128>}]} {
    %c0 = arith.constant 0 : index
    %c0_0 = arith.constant 0 : index
    %0 = vector.load %arg1[%c0, %c0_0] : memref<16x128xf32, #tpu.memory_space<vmem>>, vector<16x128xf32>
    %1 = arith.truncf %0 : vector<16x128xf32> to vector<16x128xbf16>
    %cst = arith.constant 0.000000e+00 : f32
    %2 = vector.broadcast %cst : f32 to vector<16x128xf32>
    %c0_1 = arith.constant 0 : index
    %c0_2 = arith.constant 0 : index
    %3 = vector.load %arg2[%c0_1, %c0_2] : memref<128x512xbf16, #tpu.memory_space<vmem>>, vector<128x512xbf16>
    %cst_3 = arith.constant dense<0.000000e+00> : vector<16x512xf32>
    %4 = tpu.matmul %1, %3, %cst_3 {dimension_numbers = #tpu.dot_dimension_numbers<[1], [0], [0], [1], [0, 0, 1, 1], [], []>} : vector<16x128xbf16>, vector<128x512xbf16>, vector<16x512xf32> -> vector<16x512xf32>
    %c0_4 = arith.constant 0 : index
    %c0_5 = arith.constant 0 : index
    %5 = vector.load %arg3[%c0_4, %c0_5] : memref<1x512xf32, #tpu.memory_space<vmem>>, vector<1x512xf32>
    %6 = vector.broadcast %5 : vector<1x512xf32> to vector<16x512xf32>
    %7 = arith.addf %4, %6 : vector<16x512xf32>
    %cst_6 = arith.constant 5.000000e-01 : f32
    %8 = vector.broadcast %cst_6 : f32 to vector<16x512xf32>
    %9 = arith.mulf %8, %7 : vector<16x512xf32>
    %cst_7 = arith.constant 4.471500e-02 : f32
    %10 = vector.broadcast %cst_7 : f32 to vector<16x512xf32>
    %11 = arith.mulf %10, %7 : vector<16x512xf32>
    %12 = arith.mulf %11, %7 : vector<16x512xf32>
    %13 = arith.mulf %12, %7 : vector<16x512xf32>
    %14 = arith.addf %7, %13 : vector<16x512xf32>
    %cst_8 = arith.constant 0.797884583 : f32
    %15 = vector.broadcast %cst_8 : f32 to vector<16x512xf32>
    %16 = arith.mulf %15, %14 : vector<16x512xf32>
    %17 = math.tanh %16 : vector<16x512xf32>
    %cst_9 = arith.constant 1.000000e+00 : f32
    %18 = vector.broadcast %cst_9 : f32 to vector<16x512xf32>
    %19 = arith.addf %18, %17 : vector<16x512xf32>
    %20 = arith.mulf %9, %19 : vector<16x512xf32>
    %21 = arith.truncf %20 : vector<16x512xf32> to vector<16x512xbf16>
    %c0_10 = arith.constant 0 : index
    %c0_11 = arith.constant 0 : index
    %22 = vector.load %arg4[%c0_10, %c0_11] : memref<512x128xbf16, #tpu.memory_space<vmem>>, vector<512x128xbf16>
    %cst_12 = arith.constant dense<0.000000e+00> : vector<16x128xf32>
    %23 = tpu.matmul %21, %22, %cst_12 {dimension_numbers = #tpu.dot_dimension_numbers<[1], [0], [0], [1], [0, 0, 1, 1], [], []>} : vector<16x512xbf16>, vector<512x128xbf16>, vector<16x128xf32> -> vector<16x128xf32>
    %24 = arith.addf %2, %23 : vector<16x128xf32>
    %c0_13 = arith.constant 0 : index
    %c0_14 = arith.constant 0 : index
    %25 = vector.load %arg5[%c0_13, %c0_14] : memref<1x128xf32, #tpu.memory_space<vmem>>, vector<1x128xf32>
    %26 = vector.broadcast %25 : vector<1x128xf32> to vector<16x128xf32>
    %27 = arith.addf %24, %26 : vector<16x128xf32>
    %c0_15 = arith.constant 0 : index
    %c0_16 = arith.constant 0 : index
    %28 = vector.load %arg6[%c0_15, %c0_16] : memref<16x128xf32, #tpu.memory_space<vmem>>, vector<16x128xf32>
    tpu.vector_store %arg6[%c0_15, %c0_16], %27 {strides = array<i32>} : memref<16x128xf32, #tpu.memory_space<vmem>>, vector<16x128xf32>,
    return
  }
  func.func @transform_0(%arg0: i32) -> (i32, i32) {
    %c0_i32 = arith.constant 0 : i32
    %c0_i32_0 = arith.constant 0 : i32
    return %arg0, %c0_i32 : i32, i32
  }
  func.func @transform_1(%arg0: i32) -> (i32, i32) {
    %c0_i32 = arith.constant 0 : i32
    %c0_i32_0 = arith.constant 0 : i32
    %c0_i32_1 = arith.constant 0 : i32
    return %c0_i32, %c0_i32_0 : i32, i32
  }
  func.func @transform_2(%arg0: i32) -> (i32, i32) {
    %c0_i32 = arith.constant 0 : i32
    %c0_i32_0 = arith.constant 0 : i32
    %c0_i32_1 = arith.constant 0 : i32
    return %c0_i32, %c0_i32_0 : i32, i32
  }
  func.func @transform_3(%arg0: i32) -> (i32, i32) {
    %c0_i32 = arith.constant 0 : i32
    %c0_i32_0 = arith.constant 0 : i32
    %c0_i32_1 = arith.constant 0 : i32
    return %c0_i32, %c0_i32_0 : i32, i32
  }
  func.func @transform_4(%arg0: i32) -> (i32, i32) {
    %c0_i32 = arith.constant 0 : i32
    %c0_i32_0 = arith.constant 0 : i32
    %c0_i32_1 = arith.constant 0 : i32
    return %c0_i32, %c0_i32_0 : i32, i32
  }
  func.func @transform_5(%arg0: i32) -> (i32, i32) {
    %c0_i32 = arith.constant 0 : i32
    %c0_i32_0 = arith.constant 0 : i32
    return %arg0, %c0_i32 : i32, i32
  }
}

</mosaic_0001>

<bundles_post_ra>
// kernel: tpu_custom_call.1
= control target key start
LH: loop header
LB: loop body
LE: loop exit
PB: predicated region body
PF: predicated region fallthrough
CT: control target
= control target key end

     0   :  { %10 = vsyncpa [#allocation3], 0  ;;  %s1954_s0 = inlined_call_operand.hbm [shape: f32[32,128], index: 0, kind: input, shape index: {}]   ;;  %s1955_s1 = inlined_call_operand.hbm [shape: bf16[128,512], index: 1, kind: input, shape index: {}]   ;;  %s1956_s2 = inlined_call_operand.hbm [shape: f32[1,512], index: 2, kind: input, shape index: {}]   ;;  %s1957_s3 = inlined_call_operand.hbm [shape: bf16[512,128], index: 3, kind: input, shape index: {}]   ;;  %s1958_s4 = inlined_call_operand.vmem [shape: f32[1,128], index: 4, kind: input, shape index: {}]   ;;  %s1959_s5 = inlined_call_operand.hbm [shape: f32[32,128], index: 5, kind: output, shape index: {}]  }
   0x1   :  { %12 = vsyncpa [#allocation3 + $0x1], 0 }
   0x2   :  { %13 = vsyncpa [#allocation6], 0 }
   0x3   :  { %14 = vsyncpa [#allocation9], 0 }
   0x4   :  { %15 = vsyncpa [#allocation4], 0 }
   0x5   :  { %17 = vsyncpa [#allocation4 + $0x1], 0  ;;  %s1749_s18 = smov 0   ;;  %s1751_s19 = smov 0  }
   0x6   :  { %s1753_s20 = smov 0   ;;  %s1755_s21 = smov 0  }
   0x7 LB: > { %s1770_s22 = sadd.s32 4294967295, %s1706_s21   ;;  %s1068_s23 = sadd.s32 4294967294, %s1706_s21   ;;  %s1706_s21 = sphi %s1755_s21, %s1970_s21   ;;  %s1702_s20 = sphi %s1753_s20, %s1969_s20   ;;  %s1698_s19 = sphi %s1751_s19, %s1968_s19   ;;  %s1694_s18 = sphi %s1749_s18, %s1967_s18  }
   0x8   : > { %p43_p0 = scmp.ne.s32.totalorder %s1698_s19, %s1694_s18  ;;  %p44_p1 = scmp.eq.s32.totalorder %s1770_s22, 0 }
   0x9   : > { %p151_p2 = scmp.eq.s32.totalorder %s1770_s22, 1  ;;  %p157_p3 = scmp.eq.s32.totalorder %s1068_s23, 1 }
   0xa   : > { %p1779_p4 = por %p44_p1, %p43_p0  ;;  %p1069_p5 = scmp.ge.s32.totalorder %s1706_s21, 1 }
   0xb   : > { %p1784_p6 = por %p157_p3, %p43_p0  ;;  %p164_p7 = scmp.lt.s32.totalorder %s1706_s21, 3 }
   0xc   : > { %s175_s28 = sshll.u32 %s1955_s1, 4  ;;  %s1708_s30 = smov [#allocation5]   ;;  %s176_s28 = int_to_ptr.hbm [resolvable:$true] %s175_s28 }
   0xd   : > { %p1792_p8 = pnand %p1069_p5, %p164_p7  ;;  %s177_s6 = sshll.u32 %s1708_s30, 4  ;;  %s178_s6 = int_to_ptr.vmem [resolvable:$true] %s177_s6 }
   0xe   : > { %s190_s10 = sshll.u32 %s1956_s2, 4  ;;  %s1709_s11 = smov 256   ;;  %s191_s10 = int_to_ptr.hbm [resolvable:$true] %s190_s10 }
   0xf   : > { %p1426_p9 = pneg %p1792_p8  ;;  %s1710_s12 = smov 16  }
  0x10   : > { %s1711_s13 = smov [#allocation7]   ;;  %s201_s17 = sshll.u32 %s1957_s3, 4  ;;  %s202_s17 = int_to_ptr.hbm [resolvable:$true] %s201_s17 }
  0x11   : > { %p1800_p10 = pnand %p1426_p9, %p44_p1  ;;  %s192_s14 = sshll.u32 %s1711_s13, 4  ;;  %s193_s14 = int_to_ptr.vmem [resolvable:$true] %s192_s14 }
  0x12   : > { %s1712_s23 = smov [#allocation8]   ;;  %s1713_s27 = smov 64  }
  0x13   : > { %1429 = dma.hbm_to_vmem [thread:$0]  (!%p1800_p10), %s176_s28, 4096, %s178_s6, [#allocation6], %s1709_s11, %s1709_s11, %s1710_s12  }
  0x14   : > { %1432 = dma.hbm_to_vmem [thread:$0]  (!%p1800_p10), %s191_s10, 64, %s193_s14, [#allocation6]  }
  0x15   : > { %s203_s26 = sshll.u32 %s1712_s23, 4  ;;  %s1714_s28 = smov 4   ;;  %s204_s26 = int_to_ptr.vmem [resolvable:$true] %s203_s26 }
  0x16   : > { %1435 = dma.hbm_to_vmem [thread:$0]  (!%p1800_p10), %s202_s17, 4096, %s204_s26, [#allocation9], %s1713_s27, %s1713_s27, %s1714_s28  }
  0x17   : > { %s1818_s30 = sadd.s32 1, %s1706_s21   ;;  %s30_s8 = sadd.s32 1, %s1702_s20 }
  0x18   : > { %s27_s6 = ssub.s32 %s1706_s21, %s1818_s30  ;;  %p37_p13 = scmp.ne.s32.totalorder %s1702_s20, %s1698_s19 }
  0x19   : > { %p28_p12 = scmp.eq.s32.totalorder %s27_s6, 0  ;;  %p38_p0 = scmp.eq.s32.totalorder %s1706_s21, 0 }
  0x1a   : > { %p1447_p3 = scmp.lt.s32.totalorder %s1706_s21, 2  ;;  %p1832_p7 = por %p151_p2, %p37_p13 }
  0x1b   : > { %s1828_s9 = scalar_select %p28_p12, %s1702_s20, %s30_s8  }
  0x1c   : > { %p39_p5 = por %p38_p0, %p37_p13  ;;  %s220_s7 = sand.u32 1, %s1702_s20  }
  0x1d   : > { %s1344_s11 = sshll.u32 %s1706_s21, 4  ;;  %s1074_s12 = sshll.u32 %s220_s7, 4 }
  0x1e   : > { %s229_s15 = scalar_lea.hbm %s1954_s0, %s1344_s11  ;;  %s224_s17 = scalar_lea.vmem [#allocation2], %s1074_s12 }
  0x1f   : > { %s230_s16 = sshll.u32 %s229_s15, 4  ;;  %s232_s23 = sshll.u32 %s224_s17, 4  ;;  %s231_s16 = int_to_ptr.hbm [resolvable:$true] %s230_s16  ;;  %s233_s23 = int_to_ptr.vmem [resolvable:$true] %s232_s23 }
  0x20   : > { %p1843_p9 = pnand %p1447_p3, %p39_p5  ;;  %s221_s27 = scalar_lea.sflag [#allocation3], %s220_s7 }
  0x21   : > { %s1602_s28 = sshra.s32 %s231_s16, 4  ;;  %s1609_s12 = scalar_lea.hbm %s1954_s0, 32  ;;  %s1603_s28 = int_to_ptr.hbm [resolvable:$true] %s1602_s28 }
  0x22   : > { %s1604_s6 = scalar_lea.hbm %s1603_s28, 16  ;;  %p1606_p10 = pneg %p1843_p9 }
  0x23   : > { %p1605_p2 = scmp.ne.s32.totalorder %s1603_s28, %s1604_s6  ;;  %p1610_p0 = scmp.lt.s32.totalorder %s1603_s28, %s1954_s0 }
  0x24   : > { %p1611_p3 = scmp.lt.s32.totalorder %s1609_s12, %s1604_s6 }
  0x25   : > { %p1607_p12 = pnand %p1606_p10, %p1605_p2 }
  0x26   : > { %p1612_p5 = por %p1611_p3, %p1610_p0 }
  0x27   : > { %p1608_p13 = pneg %p1607_p12 }
  0x29   : > { %p1613_p11 = pnand %p1612_p5, %p1608_p13 }
  0x2b   : > { %1616 = shalt.err (!%p1613_p11)
}
  0x2c   : > { %s1715_s7 = smov 128   ;;  %s1716_s15 = smov 8  }
  0x2d   : > { %1439 = dma.hbm_to_vmem [thread:$0]  (!%p1843_p9), %s231_s16, 256, %s233_s23, %s221_s27, %s1715_s7, %s1715_s7, %s1716_s15  }
  0x2e   : > { %244 = sbr.rel (%p1792_p8) target bundleno = 405 (0x195), region = 40  ;;  %s1860_s17 = sand.u32 (!%p1792_p8), 1, %s1698_s19  }
  0x2f   : > { %s1078_s28 = sshll.u32 (!%p1792_p8), %s1860_s17, 4  ;;  %s247_s6 = scalar_lea.sflag (!%p1792_p8), [#allocation3], %s1860_s17 }
  0x30   : > { %s1866_s8 = scalar_lea.vmem (!%p1792_p8), [#allocation2], %s1078_s28 }
  0x33   : > { %1677 = dma.done.wait (%p1779_p4), %s247_s6, 256  }
  0x34   : > { %1679 = vsyncadd (%p1779_p4), %s247_s6, 4294967040 }
  0x35   : > { %1681 = dma.done.wait (%p44_p1), [#allocation6], 4160  }
  0x36   : > { %1683 = vsyncadd (%p44_p1), [#allocation6], 4294963136 }
  0x37   : > { %1685 = dma.done.wait (%p44_p1), [#allocation9], 4096  }
  0x38   : > { %1687 = vsyncadd (%p44_p1), [#allocation9], 4294963200  ;;  %v1197_v0 = vld [vmem:[#allocation5 + $0xe0] sm:$0xf]  ;;  %v1375_v1 = vld [vmem:[#allocation5 + $0xec] sm:$0xf0] }
  0x39   : > { %v1373_v2 = vld [vmem:[#allocation5 + $0xe4] sm:$0xf]  ;;  %v1198_v3 = vor.u32 %v1375_v1, %v1197_v0  ;;  %v1199_v4 = vld [vmem:[#allocation5 + $0xf0] sm:$0xf0]  ;;  %v1205_v5 = vld [vmem:[#allocation5 + $0xe8] sm:$0xf] }
  0x3a   : > { %v1376_v6 = vld [vmem:[#allocation5 + $0xf4] sm:$0xf0]  ;;  %v1202_v7 = vor.u32 %v1373_v2, %v1199_v4  ;;  %v1374_v9 = vld [vmem:[#allocation5 + $0xec] sm:$0xf]  ;;  %v1207_v10 = vld [vmem:[#allocation5 + $0xf8] sm:$0xf0] }
  0x3b   : > { %v1206_v8 = vor.u32 %v1376_v6, %v1205_v5  ;;  %v1181_v11 = vld [vmem:[#allocation5 + $0xc0] sm:$0xf]  ;;  %500 = vmatpush.bf16.msra.mxu0 %v1198_v3  ;;  %v1210_v12 = vor.u32 %v1374_v9, %v1207_v10  ;;  %v1371_v13 = vld [vmem:[#allocation5 + $0xcc] sm:$0xf0]  ;;  %v1369_v14 = vld [vmem:[#allocation5 + $0xc4] sm:$0xf] }
  0x3c   : > { %v1183_v15 = vld [vmem:[#allocation5 + $0xd0] sm:$0xf0]  ;;  %514 = vmatpush.bf16.msra.mxu1 %v1202_v7  ;;  %v1182_v16 = vor.u32 %v1371_v13, %v1181_v11  ;;  %v1189_v18 = vld [vmem:[#allocation5 + $0xc8] sm:$0xf]  ;;  %v1372_v19 = vld [vmem:[#allocation5 + $0xd4] sm:$0xf0] }
  0x3d   : > { %528 = vmatpush.bf16.msra.mxu2 %v1206_v8  ;;  %v1186_v17 = vor.u32 %v1369_v14, %v1183_v15  ;;  %v1370_v20 = vld [vmem:[#allocation5 + $0xcc] sm:$0xf]  ;;  %542 = vmatpush.bf16.msra.mxu3 %v1210_v12  ;;  %v1190_v21 = vor.u32 %v1372_v19, %v1189_v18  ;;  %v1191_v22 = vld [vmem:[#allocation5 + $0xd8] sm:$0xf0]  ;;  %v1165_v23 = vld [vmem:[#allocation5 + $0xa0] sm:$0xf] }
  0x3e   : > { %v1367_v24 = vld [vmem:[#allocation5 + $0xac] sm:$0xf0]  ;;  %v1194_v25 = vor.u32 %v1370_v20, %v1191_v22  ;;  %v1365_v26 = vld [vmem:[#allocation5 + $0xa4] sm:$0xf]  ;;  %v1167_v27 = vld [vmem:[#allocation5 + $0xb0] sm:$0xf0] }
  0x3f   : > { %v1173_v28 = vld [vmem:[#allocation5 + $0xa8] sm:$0xf]  ;;  %501 = vmatpush.bf16.msra.mxu0 %v1182_v16  ;;  %v1166_v29 = vor.u32 %v1367_v24, %v1165_v23  ;;  %v1368_v30 = vld [vmem:[#allocation5 + $0xb4] sm:$0xf0]  ;;  %v1366_v31 = vld [vmem:[#allocation5 + $0xac] sm:$0xf]  ;;  %v1170_v33 = vor.u32 %v1365_v26, %v1167_v27 }
  0x40   : > { %v1175_v32 = vld [vmem:[#allocation5 + $0xb8] sm:$0xf0]  ;;  %515 = vmatpush.bf16.msra.mxu1 %v1186_v17  ;;  %v1174_v34 = vor.u32 %v1368_v30, %v1173_v28  ;;  %v1149_v35 = vld [vmem:[#allocation5 + $0x80] sm:$0xf]  ;;  %v1363_v36 = vld [vmem:[#allocation5 + $0x8c] sm:$0xf0] }
  0x41   : > { %529 = vmatpush.bf16.msra.mxu2 %v1190_v21  ;;  %v1361_v37 = vld [vmem:[#allocation5 + $0x84] sm:$0xf]  ;;  %543 = vmatpush.bf16.msra.mxu3 %v1194_v25  ;;  %v1178_v38 = vor.u32 %v1366_v31, %v1175_v32  ;;  %v1151_v39 = vld [vmem:[#allocation5 + $0x90] sm:$0xf0]  ;;  %v1157_v40 = vld [vmem:[#allocation5 + $0x88] sm:$0xf]  ;;  %v1150_v44 = vor.u32 %v1363_v36, %v1149_v35 }
  0x42   : > { %v1364_v41 = vld [vmem:[#allocation5 + $0x94] sm:$0xf0]  ;;  %v1362_v42 = vld [vmem:[#allocation5 + $0x8c] sm:$0xf]  ;;  %v1159_v43 = vld [vmem:[#allocation5 + $0x98] sm:$0xf0]  ;;  %v1154_v45 = vor.u32 %v1361_v37, %v1151_v39 }
  0x43   : > { %502 = vmatpush.bf16.msra.mxu0 %v1166_v29  ;;  %v1158_v46 = vor.u32 %v1364_v41, %v1157_v40  ;;  %v1133_v47 = vld [vmem:[#allocation5 + $0x60] sm:$0xf]  ;;  %v1359_v48 = vld [vmem:[#allocation5 + $0x6c] sm:$0xf0]  ;;  %v1357_v49 = vld [vmem:[#allocation5 + $0x64] sm:$0xf]  ;;  %v1162_v50 = vor.u32 %v1362_v42, %v1159_v43 }
  0x44   : > { %516 = vmatpush.bf16.msra.mxu1 %v1170_v33  ;;  %v1135_v51 = vld [vmem:[#allocation5 + $0x70] sm:$0xf0]  ;;  %v1141_v52 = vld [vmem:[#allocation5 + $0x68] sm:$0xf]  ;;  %v1360_v53 = vld [vmem:[#allocation5 + $0x74] sm:$0xf0]  ;;  %v1134_v56 = vor.u32 %v1359_v48, %v1133_v47 }
  0x45   : > { %530 = vmatpush.bf16.msra.mxu2 %v1174_v34  ;;  %544 = vmatpush.bf16.msra.mxu3 %v1178_v38  ;;  %v1358_v54 = vld [vmem:[#allocation5 + $0x6c] sm:$0xf]  ;;  %v1143_v55 = vld [vmem:[#allocation5 + $0x78] sm:$0xf0]  ;;  %v1138_v57 = vor.u32 %v1357_v49, %v1135_v51  ;;  %v1142_v58 = vor.u32 %v1360_v53, %v1141_v52  ;;  %v1117_v59 = vld [vmem:[#allocation5 + $0x40] sm:$0xf] }
  0x46   : > { %v1355_v60 = vld [vmem:[#allocation5 + $0x4c] sm:$0xf0]  ;;  %v1353_v61 = vld [vmem:[#allocation5 + $0x44] sm:$0xf]  ;;  %v1146_v62 = vor.u32 %v1358_v54, %v1143_v55  ;;  %v1119_v63 = vld [vmem:[#allocation5 + $0x50] sm:$0xf0] }
  0x47   : > { %503 = vmatpush.bf16.msra.mxu0 %v1150_v44  ;;  %v1125_v0 = vld [vmem:[#allocation5 + $0x48] sm:$0xf]  ;;  %v1356_v1 = vld [vmem:[#allocation5 + $0x54] sm:$0xf0]  ;;  %v1354_v2 = vld [vmem:[#allocation5 + $0x4c] sm:$0xf]  ;;  %v1118_v4 = vor.u32 %v1355_v60, %v1117_v59  ;;  %v1122_v5 = vor.u32 %v1353_v61, %v1119_v63 }
  0x48   : > { %517 = vmatpush.bf16.msra.mxu1 %v1154_v45  ;;  %v1127_v3 = vld [vmem:[#allocation5 + $0x58] sm:$0xf0]  ;;  %v1126_v6 = vor.u32 %v1356_v1, %v1125_v0  ;;  %v1101_v7 = vld [vmem:[#allocation5 + $0x20] sm:$0xf]  ;;  %v1351_v8 = vld [vmem:[#allocation5 + $0x2c] sm:$0xf0] }
  0x49   : > { %531 = vmatpush.bf16.msra.mxu2 %v1158_v46  ;;  %545 = vmatpush.bf16.msra.mxu3 %v1162_v50  ;;  %v1349_v9 = vld [vmem:[#allocation5 + $0x24] sm:$0xf]  ;;  %v1130_v10 = vor.u32 %v1354_v2, %v1127_v3  ;;  %v1103_v11 = vld [vmem:[#allocation5 + $0x30] sm:$0xf0]  ;;  %v1109_v12 = vld [vmem:[#allocation5 + $0x28] sm:$0xf]  ;;  %v1102_v16 = vor.u32 %v1351_v8, %v1101_v7 }
  0x4a   : > { %v1352_v13 = vld [vmem:[#allocation5 + $0x34] sm:$0xf0]  ;;  %v1350_v14 = vld [vmem:[#allocation5 + $0x2c] sm:$0xf]  ;;  %v1111_v15 = vld [vmem:[#allocation5 + $0x38] sm:$0xf0]  ;;  %v1106_v17 = vor.u32 %v1349_v9, %v1103_v11 }
  0x4b   : > { %504 = vmatpush.bf16.msra.mxu0 %v1134_v56  ;;  %v1110_v18 = vor.u32 %v1352_v13, %v1109_v12  ;;  %v1085_v19 = vld [vmem:[#allocation5] sm:$0xf]  ;;  %v1347_v20 = vld [vmem:[#allocation5 + $0xc] sm:$0xf0]  ;;  %v1345_v21 = vld [vmem:[#allocation5 + $0x4] sm:$0xf]  ;;  %v1114_v22 = vor.u32 %v1350_v14, %v1111_v15 }
  0x4c   : > { %518 = vmatpush.bf16.msra.mxu1 %v1138_v57  ;;  %v1087_v23 = vld [vmem:[#allocation5 + $0x10] sm:$0xf0]  ;;  %v1093_v24 = vld [vmem:[#allocation5 + $0x8] sm:$0xf]  ;;  %v1348_v25 = vld [vmem:[#allocation5 + $0x14] sm:$0xf0]  ;;  %v1086_v28 = vor.u32 %v1347_v20, %v1085_v19 }
  0x4d   : > { %532 = vmatpush.bf16.msra.mxu2 %v1142_v58  ;;  %546 = vmatpush.bf16.msra.mxu3 %v1146_v62  ;;  %v1346_v26 = vld [vmem:[#allocation5 + $0xc] sm:$0xf]  ;;  %v1095_v27 = vld [vmem:[#allocation5 + $0x18] sm:$0xf0]  ;;  %v295_v29 = vld [vmem:[%s1866_s8] sm:$0xff]  ;;  %v1090_v31 = vor.u32 %v1345_v21, %v1087_v23  ;;  %v1094_v32 = vor.u32 %v1348_v25, %v1093_v24  ;;  %s1409_s16 = sshll.u32 %s1770_s22, 4 }
  0x4e   : > { %v296_v30 = vld [vmem:[%s1866_s8 + $0x8] sm:$0xff]  ;;  %v1098_v33 = vor.u32 %v1346_v26, %v1095_v27  ;;  %v1882_v59 = vld [vmem:[#allocation7] sm:$0xf]  ;;  %s292_s23 = scalar_lea.vmem [#allocation10], %s1078_s28  ;;  %s962_s11 = scalar_lea.hbm %s1959_s5, %s1409_s16 }
  0x4f   : > { %505 = vmatpush.bf16.msra.mxu0 %v1118_v4  ;;  %v297_v34 = vpack.c.bf16 %v296_v30, %v295_v29  ;;  %v1384_v35 = vld [vmem:[#allocation8 + $0x38] sm:$0xff]  ;;  %v1383_v37 = vld [vmem:[#allocation8 + $0x30] sm:$0xff]  ;;  %v1382_v41 = vld [vmem:[#allocation8 + $0x28] sm:$0xff]  ;;  %v332_v62 = vperm.slane %v1882_v59, 0  ;;  %v333_v1 = vperm.slane %v1882_v59, 1  ;;  %v334_v12 = vperm.slane %v1882_v59, 2 }
  0x50   : > { %519 = vmatpush.bf16.msra.mxu1 %v1122_v5  ;;  %v1392_v36 = vld [vmem:[#allocation8 + $0x78] sm:$0xff]  ;;  %v1391_v38 = vld [vmem:[#allocation8 + $0x70] sm:$0xff]  ;;  %v1390_v42 = vld [vmem:[#allocation8 + $0x68] sm:$0xff]  ;;  %v335_v14 = vperm.slane %v1882_v59, 3  ;;  %s963_s12 = sshll.u32 %s292_s23, 4  ;;  %s965_s13 = sshll.u32 %s962_s11, 4  ;;  %s964_s12 = int_to_ptr.vmem [resolvable:$true] %s963_s12  ;;  %s966_s13 = int_to_ptr.hbm [resolvable:$true] %s965_s13 }
  0x51   : > { %533 = vmatpush.bf16.msra.mxu2 %v1126_v6  ;;  %547 = vmatpush.bf16.msra.mxu3 %v1130_v10  ;;  %v1400_v39 = vld [vmem:[#allocation8 + $0xb8] sm:$0xff]  ;;  %v1399_v43 = vld [vmem:[#allocation8 + $0xb0] sm:$0xff]  ;;  %v1381_v45 = vld [vmem:[#allocation8 + $0x20] sm:$0xff]  ;;  %s951_s22 = scalar_lea.sflag [#allocation4], %s1860_s17  ;;  %s1646_s14 = sshra.s32 %s966_s13, 4  ;;  %s1647_s14 = int_to_ptr.hbm [resolvable:$true] %s1646_s14 }
  0x52   : > { %v1408_v40 = vld [vmem:[#allocation8 + $0xf8] sm:$0xff]  ;;  %v1407_v44 = vld [vmem:[#allocation8 + $0xf0] sm:$0xff]  ;;  %v1389_v46 = vld [vmem:[#allocation8 + $0x60] sm:$0xff]  ;;  %s1648_s7 = scalar_lea.hbm %s1647_s14, 16  ;;  %s1652_s6 = scalar_lea.hbm %s1959_s5, 32 }
  0x53   : > { %506 = vmatpush.bf16.msra.mxu0 %v1102_v16  ;;  %v1398_v47 = vld [vmem:[#allocation8 + $0xa8] sm:$0xff]  ;;  %v1380_v49 = vld [vmem:[#allocation8 + $0x18] sm:$0xff]  ;;  %v1397_v51 = vld [vmem:[#allocation8 + $0xa0] sm:$0xff]  ;;  %p1649_p1 = scmp.ne.s32.totalorder %s1647_s14, %s1648_s7  ;;  %p1653_p11 = scmp.lt.s32.totalorder %s1647_s14, %s1959_s5 }
  0x54   : > { %520 = vmatpush.bf16.msra.mxu1 %v1106_v17  ;;  %v1406_v48 = vld [vmem:[#allocation8 + $0xe8] sm:$0xff]  ;;  %v1388_v50 = vld [vmem:[#allocation8 + $0x58] sm:$0xff]  ;;  %v1405_v52 = vld [vmem:[#allocation8 + $0xe0] sm:$0xff]  ;;  %p1654_p9 = scmp.lt.s32.totalorder %s1652_s6, %s1648_s7 }
  0x55   : > { %534 = vmatpush.bf16.msra.mxu2 %v1110_v18  ;;  %548 = vmatpush.bf16.msra.mxu3 %v1114_v22  ;;  %v1379_v53 = vld [vmem:[#allocation8 + $0x10] sm:$0xff]  ;;  %v1396_v55 = vld [vmem:[#allocation8 + $0x98] sm:$0xff]  ;;  %v1378_v57 = vld [vmem:[#allocation8 + $0x8] sm:$0xff]  ;;  %p1650_p4 = pnand %p1649_p1, %p1832_p7 }
  0x56   : > { %v1387_v54 = vld [vmem:[#allocation8 + $0x50] sm:$0xff]  ;;  %v1404_v56 = vld [vmem:[#allocation8 + $0xd8] sm:$0xff]  ;;  %v1386_v58 = vld [vmem:[#allocation8 + $0x48] sm:$0xff]  ;;  %p1655_p2 = por %p1654_p9, %p1653_p11 }
  0x57   : > { %507 = vmatpush.bf16.msra.mxu0 %v1086_v28  ;;  %v1395_v60 = vld [vmem:[#allocation8 + $0x90] sm:$0xff]  ;;  %v1377_v63 = vld [vmem:[#allocation8] sm:$0xff]  ;;  %v1394_v2 = vld [vmem:[#allocation8 + $0x88] sm:$0xff]  ;;  %p1651_p8 = pneg %p1650_p4 }
  0x58   : > { %521 = vmatpush.bf16.msra.mxu1 %v1090_v31  ;;  %v1403_v61 = vld [vmem:[#allocation8 + $0xd0] sm:$0xff]  ;;  %v1385_v0 = vld [vmem:[#allocation8 + $0x40] sm:$0xff]  ;;  %v1402_v3 = vld [vmem:[#allocation8 + $0xc8] sm:$0xff] }
  0x59   : > { %535 = vmatpush.bf16.msra.mxu2 %v1094_v32  ;;  %549 = vmatpush.bf16.msra.mxu3 %v1098_v33  ;;  %v1393_v9 = vld [vmem:[#allocation8 + $0x80] sm:$0xff]  ;;  %p1656_p10 = pnand %p1655_p2, %p1651_p8 }
  0x5a   : > { %508 = vmatmul.bf16.vlgmr.msra.gmra.mxu0 %v297_v34  ;;  %v1401_v10 = vld [vmem:[#allocation8 + $0xc0] sm:$0xff] }
  0x5b   : > { %522 = vmatmul.bf16.vlgmr.msra.gmra.mxu1 %v297_v34  ;;  %892 = vmatpush.bf16.msrb.mxu0 %v1384_v35 }
  0x5c   : > { %536 = vmatmul.bf16.vlgmr.msra.gmra.mxu2 %v297_v34  ;;  %550 = vmatmul.bf16.vlgmr.msra.gmra.mxu3 %v297_v34 }
  0x5d   : > { %906 = vmatpush.bf16.msrb.mxu1 %v1392_v36  ;;  %920 = vmatpush.bf16.msrb.mxu2 %v1400_v39 }
  0x5e   : > { %934 = vmatpush.bf16.msrb.mxu3 %v1408_v40 }
  0x5f   : > { %893 = vmatpush.bf16.msrb.mxu0 %v1383_v37 }
  0x61   : > { %907 = vmatpush.bf16.msrb.mxu1 %v1391_v38  ;;  %921 = vmatpush.bf16.msrb.mxu2 %v1399_v43 }
  0x62   : > { %935 = vmatpush.bf16.msrb.mxu3 %v1407_v44 }
  0x63   : > { %894 = vmatpush.bf16.msrb.mxu0 %v1382_v41 }
  0x65   : > { %908 = vmatpush.bf16.msrb.mxu1 %v1390_v42  ;;  %922 = vmatpush.bf16.msrb.mxu2 %v1398_v47 }
  0x66   : > { %936 = vmatpush.bf16.msrb.mxu3 %v1406_v48 }
  0x67   : > { %895 = vmatpush.bf16.msrb.mxu0 %v1381_v45 }
  0x69   : > { %909 = vmatpush.bf16.msrb.mxu1 %v1389_v46  ;;  %923 = vmatpush.bf16.msrb.mxu2 %v1397_v51 }
  0x6a   : > { %937 = vmatpush.bf16.msrb.mxu3 %v1405_v52 }
  0x6b   : > { %896 = vmatpush.bf16.msrb.mxu0 %v1380_v49 }
  0x6d   : > { %910 = vmatpush.bf16.msrb.mxu1 %v1388_v50  ;;  %924 = vmatpush.bf16.msrb.mxu2 %v1396_v55 }
  0x6e   : > { %938 = vmatpush.bf16.msrb.mxu3 %v1404_v56 }
  0x6f   : > { %897 = vmatpush.bf16.msrb.mxu0 %v1379_v53 }
  0x71   : > { %911 = vmatpush.bf16.msrb.mxu1 %v1387_v54  ;;  %925 = vmatpush.bf16.msrb.mxu2 %v1395_v60 }
  0x72   : > { %939 = vmatpush.bf16.msrb.mxu3 %v1403_v61 }
  0x73   : > { %898 = vmatpush.bf16.msrb.mxu0 %v1378_v57 }
  0x75   : > { %912 = vmatpush.bf16.msrb.mxu1 %v1386_v58  ;;  %926 = vmatpush.bf16.msrb.mxu2 %v1394_v2 }
  0x76   : > { %940 = vmatpush.bf16.msrb.mxu3 %v1402_v3 }
  0x77   : > { %899 = vmatpush.bf16.msrb.mxu0 %v1377_v63 }
  0x79   : > { %913 = vmatpush.bf16.msrb.mxu1 %v1385_v0  ;;  %927 = vmatpush.bf16.msrb.mxu2 %v1393_v9 }
  0x7a   : > { %941 = vmatpush.bf16.msrb.mxu3 %v1401_v10 }
  0xd7   : > { %v509_v4 = vpop.f32.mrf.mxu0 }
  0xd8   : > { %v1886_v5 = vadd.f32 %v509_v4, %v332_v62  ;;  %v523_v6 = vpop.f32.mrf.mxu1 }
  0xd9   : > { %v1888_v7 = vadd.f32 %v523_v6, %v333_v1 }
  0xda   : > { %v564_v8 = vmul.f32 0.044715, %v1886_v5 }
  0xdb   : > { %v565_v11 = vmul.f32 0.044715, %v1888_v7 }
  0xdc   : > { %v572_v13 = vmul.f32 %v564_v8, %v1886_v5  ;;  %v556_v8 = vmul.f32 0.5, %v1886_v5 }
  0xdd   : > { %v573_v15 = vmul.f32 %v565_v11, %v1888_v7  ;;  %v557_v11 = vmul.f32 0.5, %v1888_v7 }
  0xde   : > { %v580_v17 = vmul.f32 %v572_v13, %v1886_v5 }
  0xdf   : > { %v537_v16 = vpop.f32.mrf.mxu2  ;;  %v551_v19 = vpop.f32.mrf.mxu3  ;;  %v581_v21 = vmul.f32 %v573_v15, %v1888_v7 }
  0xe0   : > { %v1897_v18 = vadd.f32 %v537_v16, %v334_v12  ;;  %v511_v20 = vpop.f32.mrf.mxu0  ;;  %v1900_v22 = vadd.f32 %v551_v19, %v335_v14  ;;  %v525_v24 = vpop.f32.mrf.mxu1  ;;  %v588_v25 = vadd.f32 %v580_v17, %v1886_v5 }
  0xe1   : > { %v512_v23 = vadd.f32 %v511_v20, %v332_v62  ;;  %v526_v27 = vadd.f32 %v525_v24, %v333_v1  ;;  %v589_v28 = vadd.f32 %v581_v21, %v1888_v7 }
  0xe2   : > { %v566_v26 = vmul.f32 0.044715, %v1897_v18  ;;  %v567_v29 = vmul.f32 0.044715, %v1900_v22  ;;  %v596_v35 = vmul.f32 0.7978846, %v588_v25 }
  0xe3   : > { %v568_v30 = vmul.f32 0.044715, %v512_v23  ;;  %v569_v32 = vmul.f32 0.044715, %v526_v27  ;;  %v597_v37 = vmul.f32 0.7978846, %v589_v28 }
  0xe4   : > { %v574_v31 = vmul.f32 %v566_v26, %v1897_v18  ;;  %v575_v33 = vmul.f32 %v567_v29, %v1900_v22  ;;  %1496 = vtanh.f32 %v596_v35  ;;  %v560_v9 = vmul.f32 0.5, %v512_v23 }
  0xe5   : > { %v576_v34 = vmul.f32 %v568_v30, %v512_v23  ;;  %v577_v36 = vmul.f32 %v569_v32, %v526_v27  ;;  %1498 = vtanh.f32 %v597_v37  ;;  %v558_v28 = vmul.f32 0.5, %v1897_v18 }
  0xe6   : > { %v582_v38 = vmul.f32 %v574_v31, %v1897_v18  ;;  %v583_v41 = vmul.f32 %v575_v33, %v1900_v22  ;;  %v559_v29 = vmul.f32 0.5, %v1900_v22 }
  0xe7   : > { %v539_v39 = vpop.f32.mrf.mxu2  ;;  %v584_v40 = vmul.f32 %v576_v34, %v512_v23  ;;  %v553_v43 = vpop.f32.mrf.mxu3  ;;  %v585_v44 = vmul.f32 %v577_v36, %v526_v27 }
  0xe8   : > { %v540_v42 = vadd.f32 %v539_v39, %v334_v12  ;;  %v590_v45 = vadd.f32 %v582_v38, %v1897_v18  ;;  %v554_v46 = vadd.f32 %v553_v43, %v335_v14  ;;  %v591_v48 = vadd.f32 %v583_v41, %v1900_v22  ;;  %v1495_v18 = vld [vmem:[%s1958_s4] ss:$0 sm:$0xff] }
  0xe9   : > { %v592_v47 = vadd.f32 %v584_v40, %v512_v23  ;;  %v593_v50 = vadd.f32 %v585_v44, %v526_v27  ;;  %v561_v12 = vmul.f32 0.5, %v526_v27 }
  0xea   : > { %v570_v49 = vmul.f32 0.044715, %v540_v42  ;;  %v571_v51 = vmul.f32 0.044715, %v554_v46  ;;  %v598_v55 = vmul.f32 0.7978846, %v590_v45  ;;  %v1497_v59 = vpop.eup %1496 }
  0xeb   : > { %v600_v52 = vmul.f32 0.7978846, %v592_v47  ;;  %v601_v54 = vmul.f32 0.7978846, %v593_v50  ;;  %v599_v57 = vmul.f32 0.7978846, %v591_v48  ;;  %v1499_v61 = vpop.eup %1498 }
  0xec   : > { %v578_v53 = vmul.f32 %v570_v49, %v540_v42  ;;  %v579_v56 = vmul.f32 %v571_v51, %v554_v46  ;;  %v612_v0 = vadd.f32 1.0, %v1497_v59  ;;  %v613_v3 = vadd.f32 1.0, %v1499_v61 }
  0xed   : > { %1500 = vtanh.f32 %v600_v52  ;;  %v562_v7 = vmul.f32 0.5, %v540_v42  ;;  %v563_v30 = vmul.f32 0.5, %v554_v46 }
  0xee   : > { %1502 = vtanh.f32 %v601_v54  ;;  %v586_v58 = vmul.f32 %v578_v53, %v540_v42  ;;  %v587_v60 = vmul.f32 %v579_v56, %v554_v46  ;;  %v620_v15 = vmul.f32 %v612_v0, %v556_v8 }
  0xef   : > { %1504 = vtanh.f32 %v598_v55  ;;  %v621_v19 = vmul.f32 %v613_v3, %v557_v11 }
  0xf0   : > { %v594_v62 = vadd.f32 %v586_v58, %v540_v42  ;;  %v595_v63 = vadd.f32 %v587_v60, %v554_v46  ;;  %1506 = vtanh.f32 %v599_v57 }
  0xf2   : > { %v602_v1 = vmul.f32 0.7978846, %v594_v62  ;;  %v603_v4 = vmul.f32 0.7978846, %v595_v63 }
  0xf3   : > { %v1501_v2 = vpop.eup %1500 }
  0xf4   : > { %v1503_v6 = vpop.eup %1502  ;;  %v616_v10 = vadd.f32 1.0, %v1501_v2  ;;  %1508 = vtanh.f32 %v602_v1 }
  0xf5   : > { %v617_v13 = vadd.f32 1.0, %v1503_v6  ;;  %1510 = vtanh.f32 %v603_v4  ;;  %v1505_v14 = vpop.eup %1504 }
  0xf6   : > { %v624_v16 = vmul.f32 %v616_v10, %v560_v9  ;;  %v1507_v17 = vpop.eup %1506  ;;  %v614_v25 = vadd.f32 1.0, %v1505_v14 }
  0xf7   : > { %v625_v20 = vmul.f32 %v617_v13, %v561_v12  ;;  %v615_v5 = vadd.f32 1.0, %v1507_v17 }
  0xf8   : > { %v628_v21 = vpack.c.bf16 %v624_v16, %v620_v15  ;;  %v622_v32 = vmul.f32 %v614_v25, %v558_v28 }
  0xf9   : > { %v629_v24 = vpack.c.bf16 %v625_v20, %v621_v19  ;;  %v623_v34 = vmul.f32 %v615_v5, %v559_v29 }
  0xfa   : > { %v1509_v26 = vpop.eup %1508  ;;  %900 = vmatmul.bf16.vlgmr.msrb.gmra.mxu0 %v628_v21 }
  0xfb   : > { %v1511_v23 = vpop.eup %1510  ;;  %914 = vmatmul.bf16.vlgmr.msrb.gmra.mxu1 %v629_v24  ;;  %v618_v27 = vadd.f32 1.0, %v1509_v26 }
  0xfc   : > { %v619_v31 = vadd.f32 1.0, %v1511_v23 }
  0xfd   : > { %v626_v33 = vmul.f32 %v618_v27, %v562_v7 }
  0xfe   : > { %v627_v35 = vmul.f32 %v619_v31, %v563_v30 }
  0xff   : > { %v630_v36 = vpack.c.bf16 %v626_v33, %v622_v32 }
 0x100   : > { %v631_v37 = vpack.c.bf16 %v627_v35, %v623_v34 }
 0x101   : > { %928 = vmatmul.bf16.vlgmr.msrb.gmra.mxu2 %v630_v36 }
 0x102   : > { %942 = vmatmul.bf16.vlgmr.msrb.gmra.mxu3 %v631_v37 }
 0x177   : > { %v901_v38 = vpop.f32.mrf.mxu0 }
 0x178   : > { %v902_v39 = vadd.f32 %v1495_v18, %v901_v38  ;;  %v915_v40 = vpop.f32.mrf.mxu1 }
 0x17a   : > { %v916_v22 = vadd.f32 %v915_v40, %v902_v39 }
 0x17f   : > { %v903_v41 = vpop.f32.mrf.mxu0 }
 0x180   : > { %v904_v45 = vadd.f32 %v1495_v18, %v903_v41  ;;  %v917_v47 = vpop.f32.mrf.mxu1 }
 0x182   : > { %v918_v48 = vadd.f32 %v917_v47, %v904_v45 }
 0x184   : > { %v929_v42 = vpop.f32.mrf.mxu2 }
 0x185   : > { %v930_v43 = vadd.f32 %v929_v42, %v916_v22  ;;  %v943_v44 = vpop.f32.mrf.mxu3 }
 0x187   : > { %v944_v46 = vadd.f32 %v943_v44, %v930_v43 }
 0x189   : > { %948 = vst [vmem:[%s292_s23] sm:$0xff] %v944_v46 }
 0x18c   : > { %v931_v49 = vpop.f32.mrf.mxu2 }
 0x18d   : > { %v932_v50 = vadd.f32 %v931_v49, %v918_v48  ;;  %v945_v51 = vpop.f32.mrf.mxu3 }
 0x18f   : > { %v946_v52 = vadd.f32 %v945_v51, %v932_v50 }
 0x191   : > { %949 = vst [vmem:[%s292_s23 + $0x8] sm:$0xff] %v946_v52 }
 0x192   : > { %1659 = shalt.err (!%p1656_p10)
}
 0x193   : > { %s1717_s17 = smov 128   ;;  %s1718_s29 = smov 8  }
 0x194   : > { %1424 = dma.vmem_to_hbm [thread:$0]  (%p1832_p7), %s964_s12, 256, %s966_s13, %s951_s22, %s1717_s17, %s1717_s17, %s1718_s29  }
 0x195 PF: > { %s980_s16 = sand.u32 1, %s1694_s18   ;;  %p1966_p12 = scmp.ge.s32.totalorder %s1706_s21, 2 }
 0x196   : > { %s981_s23 = scalar_lea.sflag [#allocation4], %s980_s16 }
 0x197   : > { %p1441_p13 = pnand %p1966_p12, %p1784_p6 }
 0x199   : > { %p1442_p0 = pneg %p1441_p13 }
 0x19b   : > { %1689 = dma.done.wait (%p1442_p0), %s981_s23, 256  }
 0x19c   : > { %1691 = vsyncadd (%p1442_p0), %s981_s23, 4294967040  ;;  %p20_p3 = scmp.ge.s32.totalorder %s1818_s30, 4   ;;  %s1967_s18 = smov %s1698_s19 }
 0x19d   : > { %s1968_s19 = smov %s1702_s20  ;;  %s1969_s20 = smov %s1828_s9 }
 0x19e   : > { %s1970_s21 = smov %s1818_s30  ;;  %22 = sbr.rel (!%p20_p3) target bundleno = 7 (0x7), region = 97 }
 0x1a3   :  { %987 = vsyncpa [#allocation3], 1 }
 0x1a4   :  { %989 = vsyncpa [#allocation3 + $0x1], 1 }
 0x1a5   :  { %990 = vsyncpa [#allocation6], 1 }
 0x1a6   :  { %991 = vsyncpa [#allocation9], 1 }
 0x1a7   :  { %992 = vsyncpa [#allocation4], 1 }
 0x1a8   :  { %994 = vsyncpa [#allocation4 + $0x1], 1 }

</bundles_post_ra>
